<compile_context>
chip_gen: v7x
topology: tpu7x:2x2x1
jax: 0.10.0
libtpu: 0.0.40
codegen_flags: <defaults>
</compile_context>

<pallas_src>
import jax
import jax.numpy as jnp
from jax.experimental import pallas as pl
from jax.experimental.pallas import tpu as pltpu

NUM_CLASSES = 2
COUT = 32
EPS = 1e-5


def init_params(key, num_classes=NUM_CLASSES):
    k1, k2, k3, k4, k5, k6 = jax.random.split(key, 6)
    return {
        "conv_w":   jax.random.normal(k1, (COUT, 3, 3, 3), jnp.float32) * 0.1,
        "bn_gamma": 1.0 + 0.1 * jax.random.normal(k2, (COUT,), jnp.float32),
        "bn_beta":  0.1 * jax.random.normal(k3, (COUT,), jnp.float32),
        "bn_mean":  0.1 * jax.random.normal(k4, (COUT,), jnp.float32),
        "bn_var":   jax.random.uniform(k5, (COUT,), jnp.float32, 0.5, 1.5),
        "fc_w":     jax.random.normal(k6, (num_classes, COUT), jnp.float32) * 0.1,
        "fc_b":     jnp.zeros((num_classes,), jnp.float32),
    }


def xception_forward(x, params, num_classes=NUM_CLASSES, tile_s_cap=16384):
    N, Cin, H, W = x.shape
    KH = KW = 3
    stride, pad = 2, 1
    OH = (H + 2 * pad - KH) // stride + 1
    OW = (W + 2 * pad - KW) // stride + 1
    S = OH * OW                      # spatial positions per sample
    K = Cin * KH * KW                # conv contraction dim (27)
    Kp = 32                          # per-position feature width (27 + bias col, padded)
    G = 4                            # spatial positions packed per lane-dense row
    LANES = G * Kp                   # 128
    Cpad = 128                       # lane-dense padded class dim

    # ---- spatial tiling: multiple of G*8 positions, capped for VMEM ----
    ALIGN = G * 8
    TILE_S = min(tile_s_cap, ((S + ALIGN - 1) // ALIGN) * ALIGN)
    TILE_S = ((TILE_S + ALIGN - 1) // ALIGN) * ALIGN
    T = -(-S // TILE_S)              # spatial tiles per sample
    S_pad = T * TILE_S
    TILE_R = TILE_S // G             # packed rows per tile (multiple of 8)
    R_pad = S_pad // G

    # ---- im2col glue (pure JAX reshuffling; feature order cin-major,kh,kw) ----
    xp = jnp.pad(x, ((0, 0), (0, 0), (pad, pad), (pad, pad)))
    cols = []
    for kh in range(KH):
        for kw in range(KW):
            cols.append(xp[:, :, kh:kh + stride * OH:stride,
                               kw:kw + stride * OW:stride])     # [N,Cin,OH,OW]
    patches = jnp.stack(cols, axis=2)                  # [N, Cin, KH*KW, OH, OW]
    patches = patches.transpose(0, 3, 4, 1, 2)         # [N, OH, OW, Cin, KH*KW]
    patches = patches.reshape(N, S, K)
    # bias column (carries the BN shift through the matmul); padded rows stay 0
    ones = jnp.ones((N, S, 1), patches.dtype)
    patches = jnp.concatenate([patches, ones], axis=-1)          # [N, S, K+1]
    patches = jnp.pad(patches, ((0, 0), (0, S_pad - S), (0, Kp - (K + 1))))
    patches = patches.astype(jnp.bfloat16)
    # pack G=4 spatial positions per row -> lane-dense [N, R_pad, 128]
    packed = patches.reshape(N, R_pad, LANES)

    # ---- fold BN into an augmented conv weight; replicate block-diagonally ----
    scale = params["bn_gamma"] / jnp.sqrt(params["bn_var"] + EPS)       # [COUT]
    shift = params["bn_beta"] - params["bn_mean"] * scale               # [COUT]
    w = params["conv_w"].reshape(COUT, K).T * scale[None, :]            # [K, COUT]
    w_aug = jnp.zeros((Kp, COUT), jnp.float32)
    w_aug = w_aug.at[:K, :].set(w)
    w_aug = w_aug.at[K, :].set(shift)                                   # bias row
    w_block = jnp.kron(jnp.eye(G, dtype=jnp.float32), w_aug)            # [128, 128]
    w_block = w_block.astype(jnp.bfloat16)

    # ---- fold 1/(OH*OW) into FC weight; tile over the G packed groups ----
    fcw = jnp.pad(params["fc_w"].T,
                  ((0, 0), (0, Cpad - num_classes))) / float(S)         # [COUT, Cpad]
    fcw_tiled = jnp.tile(fcw, (G, 1))                                   # [128, Cpad]
    fcb = jnp.pad(params["fc_b"], (0, Cpad - num_classes)).reshape(1, Cpad)

    def kernel(p_ref, w_ref, fcw_ref, fcb_ref, o_ref, acc_ref):
        t = pl.program_id(1)

        @pl.when(t == 0)
        def _init():
            acc_ref[...] = jnp.zeros_like(acc_ref)

        # conv (+ BN shift via the bias column) as one lane-dense MXU matmul:
        # [TILE_R, 128](bf16) @ [128, 128](bf16) -> f32
        conv = jnp.dot(p_ref[...], w_ref[...],
                       preferred_element_type=jnp.float32)
        act = jnp.maximum(conv, 0.0)
        # partial global-avg-pool: collapse rows in groups of 8 sublanes with
        # pure vreg-wise adds; padded rows are exactly zero so no mask needed.
        acc_ref[...] += jnp.sum(act.reshape(TILE_R // 8, 8, LANES), axis=0)

        @pl.when(t == pl.num_programs(1) - 1)
        def _finalize():
            # one cross-sublane collapse, then FC (pool 1/S and the 4 packed
            # groups are folded into fcw_tiled) + bias
            pooled = jnp.sum(acc_ref[...], axis=0, keepdims=True)       # (1, 128)
            logits = jnp.dot(pooled, fcw_ref[...],
                             preferred_element_type=jnp.float32) + fcb_ref[...]
            o_ref[...] = jnp.broadcast_to(logits, o_ref.shape)

    out_padded = pl.pallas_call(
        kernel,
        out_shape=jax.ShapeDtypeStruct((N, 8, Cpad), jnp.float32),
        grid_spec=pltpu.PrefetchScalarGridSpec(
            num_scalar_prefetch=0,
            grid=(N, T),
            in_specs=[
                pl.BlockSpec((None, TILE_R, LANES), lambda n, t: (n, t, 0)),
                pl.BlockSpec((LANES, LANES),        lambda n, t: (0, 0)),
                pl.BlockSpec((LANES, Cpad),         lambda n, t: (0, 0)),
                pl.BlockSpec((1, Cpad),             lambda n, t: (0, 0)),
            ],
            out_specs=pl.BlockSpec((None, 8, Cpad), lambda n, t: (n, 0, 0)),
            scratch_shapes=[pltpu.VMEM((8, LANES), jnp.float32)],
        ),
        compiler_params=pltpu.CompilerParams(
            dimension_semantics=("parallel", "arbitrary"),
            vmem_limit_bytes=32 * 1024 * 1024,   # safe on v5e/v6e/v7x
        ),
    )(packed, w_block, fcw_tiled, fcb)

    return out_padded[:, 0, :num_classes]


def reference_forward(x, params, num_classes=NUM_CLASSES):
    conv = jax.lax.conv_general_dilated(
        x, params["conv_w"], window_strides=(2, 2),
        padding=((1, 1), (1, 1)),
        dimension_numbers=("NCHW", "OIHW", "NCHW"))
    scale = (params["bn_gamma"] / jnp.sqrt(params["bn_var"] + EPS)
             ).reshape(1, -1, 1, 1)
    shift = (params["bn_beta"]
             - params["bn_mean"] * params["bn_gamma"]
             / jnp.sqrt(params["bn_var"] + EPS)).reshape(1, -1, 1, 1)
    y = jnp.maximum(conv * scale + shift, 0.0)
    pooled = jnp.mean(y, axis=(2, 3))
    return pooled @ params["fc_w"].T + params["fc_b"]


if __name__ == "__main__":
    key = jax.random.PRNGKey(0)
    kx, kp = jax.random.split(key)
    x = jax.random.normal(kx, (2, 3, 16, 16), jnp.float32)   # NCHW
    params = init_params(kp)

    fwd = jax.jit(xception_forward)
    out = jax.block_until_ready(fwd(x, params))

    ref = reference_forward(x, params)
    assert out.shape == (2, NUM_CLASSES)
    # bf16 matmul operands (f32 accumulate) -> bf16-level tolerance vs f32 ref
    assert jnp.allclose(out, ref, atol=2e-2, rtol=2e-2), (out, ref)
    print("KERNEL_OK")
</pallas_src>

<mosaic_0001>
module attributes {stable_mosaic.version = 11 : i64} {
  func.func @kernel(%arg0: i32, %arg1: i32, %arg2: memref<1x16x128xbf16, #tpu.memory_space<vmem>>, %arg3: memref<128x128xbf16, #tpu.memory_space<vmem>>, %arg4: memref<128x128xf32, #tpu.memory_space<vmem>>, %arg5: memref<1x128xf32, #tpu.memory_space<vmem>>, %arg6: memref<1x8x128xf32, #tpu.memory_space<vmem>>, %arg7: memref<8x128xf32, #tpu.memory_space<vmem>>) attributes {dimension_semantics = [#tpu.dimension_semantics<parallel>, #tpu.dimension_semantics<arbitrary>], iteration_bounds = array<i64: 2, 1>, scalar_prefetch = 0 : i64, scratch_operands = 1 : i64, tpu.core_type = #tpu.core_type<tc>, window_params = [{transform_indices = @transform_0, window_bounds = array<i64: 1, 16, 128>}, {pipeline_mode = #tpu.pipeline_mode<synchronous>, transform_indices = @transform_1, window_bounds = array<i64: 128, 128>}, {pipeline_mode = #tpu.pipeline_mode<synchronous>, transform_indices = @transform_2, window_bounds = array<i64: 128, 128>}, {pipeline_mode = #tpu.pipeline_mode<synchronous>, transform_indices = @transform_3, window_bounds = array<i64: 1, 128>}, {transform_indices = @transform_4, window_bounds = array<i64: 1, 8, 128>}]} {
    %c0_i32 = arith.constant 0 : i32
    %0 = arith.cmpi eq, %arg1, %c0_i32 : i32
    %1 = arith.extui %0 : i1 to i32
    %c0_i32_0 = arith.constant 0 : i32
    %2 = arith.cmpi ne, %1, %c0_i32_0 : i32
    scf.if %2 {
      %cst_13 = arith.constant 0.000000e+00 : f32
      %17 = vector.broadcast %cst_13 : f32 to vector<8x128xf32>
      %c0_14 = arith.constant 0 : index
      %c0_15 = arith.constant 0 : index
      %18 = vector.load %arg7[%c0_14, %c0_15] : memref<8x128xf32, #tpu.memory_space<vmem>>, vector<8x128xf32>
      tpu.vector_store %arg7[%c0_14, %c0_15], %17 {strides = array<i32>} : memref<8x128xf32, #tpu.memory_space<vmem>>, vector<8x128xf32>,
    } else {
    }
    %c0 = arith.constant 0 : index
    %c0_1 = arith.constant 0 : index
    %c0_2 = arith.constant 0 : index
    %3 = vector.load %arg2[%c0, %c0_1, %c0_2] : memref<1x16x128xbf16, #tpu.memory_space<vmem>>, vector<1x16x128xbf16>
    %4 = vector.shape_cast %3 : vector<1x16x128xbf16> to vector<16x128xbf16>
    %c0_3 = arith.constant 0 : index
    %c0_4 = arith.constant 0 : index
    %5 = vector.load %arg3[%c0_3, %c0_4] : memref<128x128xbf16, #tpu.memory_space<vmem>>, vector<128x128xbf16>
    %cst = arith.constant dense<0.000000e+00> : vector<16x128xf32>
    %6 = tpu.matmul %4, %5, %cst {dimension_numbers = #tpu.dot_dimension_numbers<[1], [0], [0], [1], [0, 0, 1, 1], [], []>} : vector<16x128xbf16>, vector<128x128xbf16>, vector<16x128xf32> -> vector<16x128xf32>
    %cst_5 = arith.constant 0.000000e+00 : f32
    %7 = vector.broadcast %cst_5 : f32 to vector<16x128xf32>
    %8 = arith.maximumf %6, %7 : vector<16x128xf32>
    %c0_6 = arith.constant 0 : index
    %c0_7 = arith.constant 0 : index
    %9 = vector.load %arg7[%c0_6, %c0_7] : memref<8x128xf32, #tpu.memory_space<vmem>>, vector<8x128xf32>
    %10 = vector.shape_cast %8 : vector<16x128xf32> to vector<2x8x128xf32>
    %cst_8 = arith.constant dense<0.000000e+00> : vector<8x128xf32>
    %11 = vector.multi_reduction <add>, %10, %cst_8 [0] : vector<2x8x128xf32> to vector<8x128xf32>
    %12 = arith.addf %9, %11 : vector<8x128xf32>
    %c0_9 = arith.constant 0 : index
    %c0_10 = arith.constant 0 : index
    %13 = vector.load %arg7[%c0_9, %c0_10] : memref<8x128xf32, #tpu.memory_space<vmem>>, vector<8x128xf32>
    tpu.vector_store %arg7[%c0_9, %c0_10], %12 {strides = array<i32>} : memref<8x128xf32, #tpu.memory_space<vmem>>, vector<8x128xf32>,
    %c0_i32_11 = arith.constant 0 : i32
    %14 = arith.cmpi eq, %arg1, %c0_i32_11 : i32
    %15 = arith.extui %14 : i1 to i32
    %c0_i32_12 = arith.constant 0 : i32
    %16 = arith.cmpi ne, %15, %c0_i32_12 : i32
    scf.if %16 {
      %c0_13 = arith.constant 0 : index
      %c0_14 = arith.constant 0 : index
      %17 = vector.load %arg7[%c0_13, %c0_14] : memref<8x128xf32, #tpu.memory_space<vmem>>, vector<8x128xf32>
      %cst_15 = arith.constant dense<0.000000e+00> : vector<128xf32>
      %18 = vector.multi_reduction <add>, %17, %cst_15 [0] : vector<8x128xf32> to vector<128xf32>
      %19 = vector.shape_cast %18 : vector<128xf32> to vector<1x128xf32>
      %c0_16 = arith.constant 0 : index
      %c0_17 = arith.constant 0 : index
      %20 = vector.load %arg4[%c0_16, %c0_17] : memref<128x128xf32, #tpu.memory_space<vmem>>, vector<128x128xf32>
      %cst_18 = arith.constant dense<0.000000e+00> : vector<1x128xf32>
      %21 = tpu.matmul %19, %20, %cst_18 {dimension_numbers = #tpu.dot_dimension_numbers<[1], [0], [0], [1], [0, 0, 1, 1], [], []>} : vector<1x128xf32>, vector<128x128xf32>, vector<1x128xf32> -> vector<1x128xf32>
      %c0_19 = arith.constant 0 : index
      %c0_20 = arith.constant 0 : index
      %22 = vector.load %arg5[%c0_19, %c0_20] : memref<1x128xf32, #tpu.memory_space<vmem>>, vector<1x128xf32>
      %23 = arith.addf %21, %22 : vector<1x128xf32>
      %24 = vector.shape_cast %23 : vector<1x128xf32> to vector<1x128xf32>
      %25 = vector.broadcast %24 : vector<1x128xf32> to vector<8x128xf32>
      %c0_21 = arith.constant 0 : index
      %c0_22 = arith.constant 0 : index
      %c0_23 = arith.constant 0 : index
      %26 = vector.load %arg6[%c0_21, %c0_22, %c0_23] : memref<1x8x128xf32, #tpu.memory_space<vmem>>, vector<1x8x128xf32>
      %27 = vector.shape_cast %26 : vector<1x8x128xf32> to vector<8x128xf32>
      %28 = vector.shape_cast %25 : vector<8x128xf32> to vector<1x8x128xf32>
      tpu.vector_store %arg6[%c0_21, %c0_22, %c0_23], %28 {strides = array<i32>} : memref<1x8x128xf32, #tpu.memory_space<vmem>>, vector<1x8x128xf32>,
    } else {
    }
    return
  }
  func.func @transform_0(%arg0: i32, %arg1: i32) -> (i32, i32, i32) {
    %c0_i32 = arith.constant 0 : i32
    %c0_i32_0 = arith.constant 0 : i32
    return %arg0, %arg1, %c0_i32 : i32, i32, i32
  }
  func.func @transform_1(%arg0: i32, %arg1: i32) -> (i32, i32) {
    %c0_i32 = arith.constant 0 : i32
    %c0_i32_0 = arith.constant 0 : i32
    %c0_i32_1 = arith.constant 0 : i32
    return %c0_i32, %c0_i32_0 : i32, i32
  }
  func.func @transform_2(%arg0: i32, %arg1: i32) -> (i32, i32) {
    %c0_i32 = arith.constant 0 : i32
    %c0_i32_0 = arith.constant 0 : i32
    %c0_i32_1 = arith.constant 0 : i32
    return %c0_i32, %c0_i32_0 : i32, i32
  }
  func.func @transform_3(%arg0: i32, %arg1: i32) -> (i32, i32) {
    %c0_i32 = arith.constant 0 : i32
    %c0_i32_0 = arith.constant 0 : i32
    %c0_i32_1 = arith.constant 0 : i32
    return %c0_i32, %c0_i32_0 : i32, i32
  }
  func.func @transform_4(%arg0: i32, %arg1: i32) -> (i32, i32, i32) {
    %c0_i32 = arith.constant 0 : i32
    %c0_i32_0 = arith.constant 0 : i32
    %c0_i32_1 = arith.constant 0 : i32
    return %arg0, %c0_i32, %c0_i32_0 : i32, i32, i32
  }
}

</mosaic_0001>

<bundles_post_ra>
// kernel: xception_forward.1
= control target key start
LH: loop header
LB: loop body
LE: loop exit
PB: predicated region body
PF: predicated region fallthrough
CT: control target
= control target key end

     0   :  { %s731_s15 = smov 0   ;;  %s733_s16 = smov 0   ;;  %s849_s0 = inlined_call_operand.vmem [shape: bf16[2,16,128], index: 0, kind: input, shape index: {}]   ;;  %s850_s1 = inlined_call_operand.vmem [shape: bf16[128,128], index: 1, kind: input, shape index: {}]   ;;  %s851_s2 = inlined_call_operand.vmem [shape: f32[128,128], index: 2, kind: input, shape index: {}]   ;;  %s852_s3 = inlined_call_operand.vmem [shape: f32[1,128], index: 3, kind: input, shape index: {}]   ;;  %s853_s4 = inlined_call_operand.vmem [shape: f32[2,8,128], index: 4, kind: output, shape index: {}]  }
   0x1   :  { %s735_s17 = smov 0  }
   0x2 LB: > { %s26_s18 = sadd.s32 1, %s697_s16  ;;  %p522_p0 = scmp.ge.s32.totalorder %s701_s17, 1  ;;  %s701_s17 = sphi %s735_s17, %s14_s17   ;;  %s697_s16 = sphi %s733_s16, %s855_s16   ;;  %s693_s15 = sphi %s731_s15, %s854_s15  }
   0x3   : > { %p28_p1 = scmp.ge.s32.totalorder %s26_s18, 2  ;;  %p181_p2 = scmp.lt.s32.totalorder %s701_s17, 3 }
   0x5   : > { %s857_s18 = smov (%p28_p1, %s26_s18), 0  ;;  %p182_p3 = pnand %p522_p0, %p181_p2 }
   0x6   : > { %v670_v0 = vld [vmem:[%s850_s1] sm:$0xff] (!%p182_p3)   ;;  %v703_v1 = vmov (!%p182_p3), 0.0   ;;  %v671_v2 = vld [vmem:[%s850_s1 + $0x8] sm:$0xff] (!%p182_p3)   ;;  %vm704_vm0 = vmmov (!%p182_p3), 0   ;;  %p211_p4 = scmp.lt.s32.totalorder (!%p182_p3), %s693_s15, 1  ;;  %v705_v3 = vmov (!%p182_p3), 0.0|0.0   ;;  %v446_v48 = vlaneseq (!%p182_p3) }
   0x7   : > { %185 = sbr.rel (%p182_p3) target bundleno = 486 (0x1e6), region = 36  ;;  %564 = vmatprep.subr.bf16.mxu0 (!%p182_p3), %v703_v1  ;;  %580 = vmatprep.mubr.msk.bf16.mxu0 (!%p182_p3), %vm704_vm0, %v703_v1  ;;  %v672_v4 = vld [vmem:[%s850_s1 + $0x10] sm:$0xff] (!%p182_p3)   ;;  %v359_v5 = vld [vmem:[%s851_s2] sm:$0xff] (!%p182_p3)  ;;  %v360_v6 = vld [vmem:[%s851_s2 + $0x8] sm:$0xff] (!%p182_p3) }
   0x8   : > { %565 = vmatpush3.bf16.msra.mxu0 (!%p182_p3), %v670_v0  ;;  %616 = vmatprep.mubr.msk.f32.mxu1 (!%p182_p3), %vm704_vm0, %v703_v1  ;;  %v361_v7 = vld [vmem:[%s851_s2 + $0x10] sm:$0xff] (!%p182_p3)  ;;  %v673_v8 = vld [vmem:[%s850_s1 + $0x18] sm:$0xff] (!%p182_p3)   ;;  %v620_v9 = vpack.c.bf16 (!%p182_p3), %v360_v6, %v359_v5  ;;  %v363_v12 = vld [vmem:[%s851_s2 + $0x20] sm:$0xff] (!%p182_p3)  ;;  %v447_v49 = vshrl.u32 (!%p182_p3), %v446_v48, 7 }
   0x9   : > { %566 = vmatprep.subr.bf16.mxu0 (!%p182_p3), %v703_v1  ;;  %619 = vmatprep.subr.bf16.mxu1 (!%p182_p3), %v705_v3  ;;  %v362_v10 = vld [vmem:[%s851_s2 + $0x18] sm:$0xff] (!%p182_p3)  ;;  %v364_v13 = vld [vmem:[%s851_s2 + $0x28] sm:$0xff] (!%p182_p3)  ;;  %v674_v14 = vld [vmem:[%s850_s1 + $0x20] sm:$0xff] (!%p182_p3)  }
   0xa   : > { %621 = vmatpush3.bf16.msra.mxu1 (!%p182_p3), %v620_v9  ;;  %v623_v11 = vpack.c.bf16 (!%p182_p3), %v362_v10, %v361_v7  ;;  %v626_v15 = vpack.c.bf16 (!%p182_p3), %v364_v13, %v363_v12  ;;  %v675_v16 = vld [vmem:[%s850_s1 + $0x28] sm:$0xff] (!%p182_p3)   ;;  %v676_v17 = vld [vmem:[%s850_s1 + $0x30] sm:$0xff] (!%p182_p3)   ;;  %v677_v18 = vld [vmem:[%s850_s1 + $0x38] sm:$0xff] (!%p182_p3)   ;;  %v448_v51 = vsub.s32 (!%p182_p3), 0, %v447_v49 }
   0xb   : > { %622 = vmatprep.subr.bf16.mxu1 (!%p182_p3), %v705_v3  ;;  %v365_v20 = vld [vmem:[%s851_s2 + $0x30] sm:$0xff] (!%p182_p3)  ;;  %v366_v21 = vld [vmem:[%s851_s2 + $0x38] sm:$0xff] (!%p182_p3)  ;;  %v367_v23 = vld [vmem:[%s851_s2 + $0x40] sm:$0xff] (!%p182_p3) }
   0xc   : > { %567 = vmatpush3.bf16.msra.mxu0 (!%p182_p3), %v671_v2  ;;  %v629_v22 = vpack.c.bf16 (!%p182_p3), %v366_v21, %v365_v20  ;;  %v368_v24 = vld [vmem:[%s851_s2 + $0x48] sm:$0xff] (!%p182_p3)  ;;  %v369_v26 = vld [vmem:[%s851_s2 + $0x50] sm:$0xff] (!%p182_p3)  ;;  %v370_v27 = vld [vmem:[%s851_s2 + $0x58] sm:$0xff] (!%p182_p3) }
   0xd   : > { %568 = vmatprep.subr.bf16.mxu0 (!%p182_p3), %v703_v1  ;;  %v632_v25 = vpack.c.bf16 (!%p182_p3), %v368_v24, %v367_v23  ;;  %v635_v28 = vpack.c.bf16 (!%p182_p3), %v370_v27, %v369_v26  ;;  %v371_v29 = vld [vmem:[%s851_s2 + $0x60] sm:$0xff] (!%p182_p3)  ;;  %v372_v30 = vld [vmem:[%s851_s2 + $0x68] sm:$0xff] (!%p182_p3)  ;;  %v373_v32 = vld [vmem:[%s851_s2 + $0x70] sm:$0xff] (!%p182_p3) }
   0xe   : > { %s859_s15 = smov (!%p211_p4, %s693_s15), 1  ;;  %624 = vmatpush3.bf16.msra.mxu1 %v623_v11  ;;  %v638_v31 = vpack.c.bf16 %v372_v30, %v371_v29  ;;  %v374_v33 = vld [vmem:[%s851_s2 + $0x78] sm:$0xff]  ;;  %v375_v50 = vld [vmem:[%s852_s3] sm:$0x1] }
   0xf   : > { %s537_s25 = sshll.u32 %s859_s15, 3  ;;  %625 = vmatprep.subr.bf16.mxu1 %v705_v3  ;;  %v641_v34 = vpack.c.bf16 %v374_v33, %v373_v32 }
  0x10   : > { %s766_s28 = scalar_lea.vmem %s849_s0, %s537_s25  ;;  %569 = vmatpush3.bf16.msra.mxu0 %v672_v4  ;;  %s223_s8 = scalar_lea.vmem %s853_s4, %s537_s25 }
  0x11   : > { %570 = vmatprep.subr.bf16.mxu0 %v703_v1  ;;  %v678_v19 = vld [vmem:[%s766_s28] sm:$0xff]  }
  0x12   : > { %627 = vmatpush3.bf16.msra.mxu1 %v626_v15 }
  0x13   : > { %628 = vmatprep.subr.bf16.mxu1 %v705_v3 }
  0x14   : > { %571 = vmatpush3.bf16.msra.mxu0 %v673_v8 }
  0x15   : > { %572 = vmatprep.subr.bf16.mxu0 %v703_v1 }
  0x16   : > { %630 = vmatpush3.bf16.msra.mxu1 %v629_v22 }
  0x17   : > { %631 = vmatprep.subr.bf16.mxu1 %v705_v3 }
  0x18   : > { %573 = vmatpush3.bf16.msra.mxu0 %v674_v14 }
  0x19   : > { %574 = vmatprep.subr.bf16.mxu0 %v703_v1 }
  0x1a   : > { %633 = vmatpush3.bf16.msra.mxu1 %v632_v25 }
  0x1b   : > { %634 = vmatprep.subr.bf16.mxu1 %v705_v3 }
  0x1c   : > { %575 = vmatpush3.bf16.msra.mxu0 %v675_v16 }
  0x1d   : > { %576 = vmatprep.subr.bf16.mxu0 %v703_v1 }
  0x1e   : > { %636 = vmatpush3.bf16.msra.mxu1 %v635_v28 }
  0x1f   : > { %637 = vmatprep.subr.bf16.mxu1 %v705_v3 }
  0x20   : > { %577 = vmatpush3.bf16.msra.mxu0 %v676_v17 }
  0x21   : > { %578 = vmatprep.subr.bf16.mxu0 %v703_v1 }
  0x22   : > { %639 = vmatpush3.bf16.msra.mxu1 %v638_v31 }
  0x23   : > { %640 = vmatprep.subr.bf16.mxu1 %v705_v3 }
  0x24   : > { %579 = vmatpush3.bf16.msra.mxu0 %v677_v18 }
  0x26   : > { %642 = vmatpush3.bf16.msra.mxu1 %v641_v34 }
  0x27   : > { %581 = vmatmul.mubr.bf16.vlgmr.msra.gmra.mrb[0].mxu0 %v678_v19 }
  0xfa   : > { %v336_v35 = vpop.f32.mrb[0].mxu0 }
  0xfb   : > { %v582_v36 = vpop.f32.mrb[1].mxu0  ;;  %v343_v38 = vmax.f32 %v336_v35, 0.0 }
  0xfc   : > { %v339_v37 = vpop.f32.mrb[2].mxu0 }
  0xfd   : > { %v344_v39 = vmax.f32 %v339_v37, 0.0  ;;  %v583_v40 = vpop.f32.mrb[3].mxu0 }
  0xff   : > { %v346_v41 = vadd.f32 %v344_v39, %v343_v38 }
 0x101   : > { %v353_v42 = vrot.slane %v346_v41, 4 }
 0x103   : > { %v354_v43 = vadd.f32 %v353_v42, %v346_v41 }
 0x105   : > { %v355_v44 = vrot.slane %v354_v43, 2 }
 0x107   : > { %v356_v45 = vadd.f32 %v355_v44, %v354_v43 }
 0x109   : > { %v357_v46 = vrot.slane %v356_v45, 1 }
 0x10b   : > { %v358_v47 = vadd.f32 %v357_v46, %v356_v45 }
 0x10d   : > { %617 = vmatmul.mubr.f32.vlgmr.msra.gmra.mrb[0].mxu1 %v358_v47 }
 0x1e0   : > { %v442_v52 = vpop.f32.mrb[0].mxu1 }
 0x1e1   : > { %v443_v53 = vadd.f32 %v442_v52, %v375_v50  ;;  %v618_v54 = vpop.f32.mrb[1].mxu1 }
 0x1e3   : > { %v449_v55 = vrot.slane %v443_v53, %v448_v51 }
 0x1e5   : > { %450 = vst [vmem:[%s223_s8] sm:$0xff] %v449_v55 }
 0x1e6 PF: > { %s14_s17 = sadd.s32 1, %s701_s17   ;;  %s854_s15 = smov %s697_s16 }
 0x1e7   : > { %p11_p5 = scmp.ge.s32.totalorder %s14_s17, 4   ;;  %s855_s16 = smov %s857_s18 }
 0x1e9   :  { %13 = sbr.rel (!%p11_p5) target bundleno = 2 (0x2), region = 74 }

</bundles_post_ra>
